<compile_context>
chip_gen: v7x
topology: tpu7x:2x2x1
jax: 0.10.0
libtpu: 0.0.40
codegen_flags: <defaults>
</compile_context>

<pallas_src>
import functools

import jax
import jax.numpy as jnp
from jax import lax
from jax.experimental import pallas as pl
from jax.experimental.pallas import tpu as pltpu

IN_FEATS = 28 * 28        # 784 (multiple of 8 -> legal unpadded sublane/lane dim)
HIDDEN = 250
OUT_FEATS = 10

HID_PAD = 256             # 2 * 128 lanes
OUT_PAD = 128             # 1 * 128 lanes -> lane-dense output stores

P_IN = 0.1                # dropout on the input
P_HID = 0.2               # dropout on the hidden activations

MAX_TILE_B = 1024         # multiple of 16; keeps hash temporaries well inside VMEM


def _round_up(x, m):
    return ((x + m - 1) // m) * m


def _choose_tile_b(batch):
    r = _round_up(batch, 16)          # bf16 packs 2 rows/sublane -> 16-row granularity
    if r <= 256:
        return r                      # tiny batch: single tile
    # >= 2 grid tiles so both v7x TensorCores get work; cap tile size for VMEM.
    return min(MAX_TILE_B, _round_up(pl.cdiv(batch, 2), 16))


def _keep_mask(shape, seed_u32, row0_u32, salt, p):
    """Boolean keep-mask (True with prob ~1-p) from a cheap stateless integer hash."""
    rows = lax.broadcasted_iota(jnp.int32, shape, 0).astype(jnp.uint32) + row0_u32
    cols = lax.broadcasted_iota(jnp.int32, shape, 1).astype(jnp.uint32)
    x = rows * jnp.uint32(0x9E3779B1) + cols * jnp.uint32(0x85EBCA77)
    x = x ^ (seed_u32 * jnp.uint32(0xC2B2AE35) + jnp.uint32((salt * 0x27D4EB2F) & 0xFFFFFFFF))
    # single xorshift-mul-xorshift finalizer round (adequate for dropout masks)
    x = x ^ (x >> jnp.uint32(15))
    x = x * jnp.uint32(0x2C1B3C6D)
    x = x ^ (x >> jnp.uint32(12))
    bits31 = (x >> jnp.uint32(1)).astype(jnp.int32)          # uniform in [0, 2^31)
    thresh = jnp.int32(int(round(p * (1 << 31))))
    return bits31 >= thresh                                  # keep with prob ~1-p


def student_kernel(seed_ref, x_ref, w1_ref, b1_ref, w2_ref, b2_ref, o_ref,
                   *, tile_b, training):
    seed = seed_ref[0].astype(jnp.uint32)
    row0 = (pl.program_id(0) * tile_b).astype(jnp.uint32)    # distinct mask per batch tile

    xb = x_ref[...]                                          # (tile_b, 784) bf16
    if training:
        keep = _keep_mask(xb.shape, seed, row0, salt=1, p=P_IN)
        xb = jnp.where(keep, xb, jnp.bfloat16(0))            # 1/(1-p) folded into w1

    h = jnp.dot(xb, w1_ref[...], preferred_element_type=jnp.float32) + b1_ref[...]
    h = jnp.maximum(h, 0.0)                                  # (tile_b, HID_PAD) f32
    hb = h.astype(jnp.bfloat16)
    if training:
        keep = _keep_mask(hb.shape, seed, row0, salt=2, p=P_HID)
        hb = jnp.where(keep, hb, jnp.bfloat16(0))            # 1/(1-p) folded into w2

    out = jnp.dot(hb, w2_ref[...], preferred_element_type=jnp.float32) + b2_ref[...]
    o_ref[...] = out.astype(jnp.bfloat16)                    # (tile_b, OUT_PAD) bf16


def prepare_params(w1_t, b1_t, w2_t, b2_t, training=True):
    """PyTorch nn.Linear-layout params -> transposed, lane-padded, scale-folded params.

    w1_t: (250, 784), b1_t: (250,), w2_t: (10, 250), b2_t: (10,)
    """
    s1 = 1.0 / (1.0 - P_IN) if training else 1.0
    s2 = 1.0 / (1.0 - P_HID) if training else 1.0
    w1 = jnp.zeros((IN_FEATS, HID_PAD), jnp.float32).at[:, :HIDDEN].set(
        jnp.asarray(w1_t, jnp.float32).T * s1)
    b1 = jnp.zeros((1, HID_PAD), jnp.float32).at[:, :HIDDEN].set(
        jnp.asarray(b1_t, jnp.float32)[None, :])
    w2 = jnp.zeros((HID_PAD, OUT_PAD), jnp.float32).at[:HIDDEN, :OUT_FEATS].set(
        jnp.asarray(w2_t, jnp.float32).T * s2)
    b2 = jnp.zeros((1, OUT_PAD), jnp.float32).at[:, :OUT_FEATS].set(
        jnp.asarray(b2_t, jnp.float32)[None, :])
    return w1.astype(jnp.bfloat16), b1, w2.astype(jnp.bfloat16), b2


@functools.partial(jax.jit, static_argnames=("training",))
def student_forward(x, w1, b1, w2, b2, seed, training=True):
    """x: any shape reshapable to (-1, 784); returns (batch, 10) float32 logits."""
    x2d = x.reshape(-1, IN_FEATS).astype(jnp.bfloat16)       # no-op if caller passes bf16
    batch = x2d.shape[0]

    tile_b = _choose_tile_b(batch)
    num_tiles = pl.cdiv(batch, tile_b)                       # ragged last block: no jnp.pad
    b_pad = num_tiles * tile_b                               # padded output alloc only

    kernel = functools.partial(student_kernel, tile_b=tile_b, training=training)
    out_pad = pl.pallas_call(
        kernel,
        out_shape=jax.ShapeDtypeStruct((b_pad, OUT_PAD), jnp.bfloat16),
        grid_spec=pltpu.PrefetchScalarGridSpec(
            num_scalar_prefetch=1,                           # seed lives in SMEM
            grid=(num_tiles,),
            in_specs=[
                pl.BlockSpec((tile_b, IN_FEATS), lambda i, s: (i, 0)),   # bf16 x stream
                pl.BlockSpec((IN_FEATS, HID_PAD), lambda i, s: (0, 0)),  # resident w1
                pl.BlockSpec((1, HID_PAD), lambda i, s: (0, 0)),         # resident b1
                pl.BlockSpec((HID_PAD, OUT_PAD), lambda i, s: (0, 0)),   # resident w2
                pl.BlockSpec((1, OUT_PAD), lambda i, s: (0, 0)),         # resident b2
            ],
            out_specs=pl.BlockSpec((tile_b, OUT_PAD), lambda i, s: (i, 0)),
        ),
        compiler_params=pltpu.CompilerParams(
            dimension_semantics=("parallel",),               # batch tiles independent
            vmem_limit_bytes=40 * 1024 * 1024),
    )(seed, x2d, w1, b1, w2, b2)

    return out_pad[:batch, :OUT_FEATS].astype(jnp.float32)


def init_params(key):
    """Deterministic synthetic parameters in PyTorch nn.Linear layout."""
    k1, k2, k3, k4 = jax.random.split(key, 4)
    w1_t = jax.random.normal(k1, (HIDDEN, IN_FEATS), jnp.float32) / jnp.sqrt(IN_FEATS)
    b1_t = jax.random.normal(k2, (HIDDEN,), jnp.float32) * 0.01
    w2_t = jax.random.normal(k3, (OUT_FEATS, HIDDEN), jnp.float32) / jnp.sqrt(HIDDEN)
    b2_t = jax.random.normal(k4, (OUT_FEATS,), jnp.float32) * 0.01
    return w1_t, b1_t, w2_t, b2_t


if __name__ == "__main__":
    key = jax.random.PRNGKey(0)
    k_params, k_x = jax.random.split(key)
    w1_t, b1_t, w2_t, b2_t = init_params(k_params)

    # Small MNIST-like batch: (2, 1, 28, 28) NCHW; forward views it as (-1, 784).
    x = jax.random.normal(k_x, (2, 1, 28, 28), jnp.float32).astype(jnp.bfloat16)
    seed = jnp.array([42], dtype=jnp.int32)

    # Training-mode forward (dropout active), matching the module's defaults.
    params_tr = prepare_params(w1_t, b1_t, w2_t, b2_t, training=True)
    out = jax.block_until_ready(student_forward(x, *params_tr, seed, training=True))
    assert out.shape == (2, OUT_FEATS), out.shape
    assert bool(jnp.all(jnp.isfinite(out)))

    # Eval-mode forward (dropout = identity) checked against a pure-JAX reference.
    params_ev = prepare_params(w1_t, b1_t, w2_t, b2_t, training=False)
    out_ev = jax.block_until_ready(student_forward(x, *params_ev, seed, training=False))
    x2d = x.reshape(-1, IN_FEATS).astype(jnp.float32)
    ref = jnp.maximum(x2d @ w1_t.T + b1_t, 0.0) @ w2_t.T + b2_t
    assert jnp.allclose(out_ev, ref, atol=5e-2, rtol=5e-2), jnp.max(jnp.abs(out_ev - ref))

    print("KERNEL_OK")
</pallas_src>

<mosaic_0001>
module attributes {stable_mosaic.version = 11 : i64} {
  func.func @student_kernel(%arg0: i32, %arg1: memref<1xi32, #tpu.memory_space<smem>>, %arg2: memref<16x784xbf16, #tpu.memory_space<vmem>>, %arg3: memref<784x256xbf16, #tpu.memory_space<vmem>>, %arg4: memref<1x256xf32, #tpu.memory_space<vmem>>, %arg5: memref<256x128xbf16, #tpu.memory_space<vmem>>, %arg6: memref<1x128xf32, #tpu.memory_space<vmem>>, %arg7: memref<16x128xbf16, #tpu.memory_space<vmem>>) attributes {dimension_semantics = [#tpu.dimension_semantics<parallel>], iteration_bounds = array<i64: 1>, scalar_prefetch = 1 : i64, scratch_operands = 0 : i64, tpu.core_type = #tpu.core_type<tc>, window_params = [{transform_indices = @transform_0, window_bounds = array<i64: 16, 784>}, {pipeline_mode = #tpu.pipeline_mode<synchronous>, transform_indices = @transform_1, window_bounds = array<i64: 784, 256>}, {pipeline_mode = #tpu.pipeline_mode<synchronous>, transform_indices = @transform_2, window_bounds = array<i64: 1, 256>}, {pipeline_mode = #tpu.pipeline_mode<synchronous>, transform_indices = @transform_3, window_bounds = array<i64: 256, 128>}, {pipeline_mode = #tpu.pipeline_mode<synchronous>, transform_indices = @transform_4, window_bounds = array<i64: 1, 128>}, {transform_indices = @transform_5, window_bounds = array<i64: 16, 128>}]} {
    %c0 = arith.constant 0 : index
    %0 = memref.load %arg1[%c0] : memref<1xi32, #tpu.memory_space<smem>>
    %c16_i32 = arith.constant 16 : i32
    %1 = arith.muli %arg0, %c16_i32 : i32
    %c0_0 = arith.constant 0 : index
    %c0_1 = arith.constant 0 : index
    %2 = vector.load %arg2[%c0_0, %c0_1] : memref<16x784xbf16, #tpu.memory_space<vmem>>, vector<16x784xbf16>
    %3 = tpu.iota {dimensions = array<i32: 0>} : vector<16x784xi32>
    %4 = vector.broadcast %1 : i32 to vector<16x784xi32>
    %5 = arith.addi %3, %4 : vector<16x784xi32>
    %6 = tpu.iota {dimensions = array<i32: 1>} : vector<16x784xi32>
    %c-1640531535_i32 = arith.constant -1640531535 : i32
    %7 = vector.broadcast %c-1640531535_i32 : i32 to vector<16x784xi32>
    %8 = arith.muli %5, %7 : vector<16x784xi32>
    %c-2048144777_i32 = arith.constant -2048144777 : i32
    %9 = vector.broadcast %c-2048144777_i32 : i32 to vector<16x784xi32>
    %10 = arith.muli %6, %9 : vector<16x784xi32>
    %11 = arith.addi %8, %10 : vector<16x784xi32>
    %c-1028477387_i32 = arith.constant -1028477387 : i32
    %12 = arith.muli %0, %c-1028477387_i32 : i32
    %c668265263_i32 = arith.constant 668265263 : i32
    %13 = arith.addi %12, %c668265263_i32 : i32
    %14 = vector.broadcast %13 : i32 to vector<16x784xi32>
    %15 = arith.xori %11, %14 : vector<16x784xi32>
    %c15_i32 = arith.constant 15 : i32
    %16 = vector.broadcast %c15_i32 : i32 to vector<16x784xi32>
    %17 = arith.shrui %15, %16 : vector<16x784xi32>
    %18 = arith.xori %15, %17 : vector<16x784xi32>
    %c739982445_i32 = arith.constant 739982445 : i32
    %19 = vector.broadcast %c739982445_i32 : i32 to vector<16x784xi32>
    %20 = arith.muli %18, %19 : vector<16x784xi32>
    %c12_i32 = arith.constant 12 : i32
    %21 = vector.broadcast %c12_i32 : i32 to vector<16x784xi32>
    %22 = arith.shrui %20, %21 : vector<16x784xi32>
    %23 = arith.xori %20, %22 : vector<16x784xi32>
    %c1_i32 = arith.constant 1 : i32
    %24 = vector.broadcast %c1_i32 : i32 to vector<16x784xi32>
    %25 = arith.shrui %23, %24 : vector<16x784xi32>
    %c214748365_i32 = arith.constant 214748365 : i32
    %26 = vector.broadcast %c214748365_i32 : i32 to vector<16x784xi32>
    %27 = arith.cmpi sge, %25, %26 : vector<16x784xi32>
    %cst = arith.constant 0.000000e+00 : bf16
    %28 = vector.broadcast %cst : bf16 to vector<16x784xbf16>
    %29 = arith.select %27, %2, %28 : vector<16x784xi1>, vector<16x784xbf16>
    %c0_2 = arith.constant 0 : index
    %c0_3 = arith.constant 0 : index
    %30 = vector.load %arg3[%c0_2, %c0_3] : memref<784x256xbf16, #tpu.memory_space<vmem>>, vector<784x256xbf16>
    %cst_4 = arith.constant dense<0.000000e+00> : vector<16x256xf32>
    %31 = tpu.matmul %29, %30, %cst_4 {dimension_numbers = #tpu.dot_dimension_numbers<[1], [0], [0], [1], [0, 0, 1, 1], [], []>} : vector<16x784xbf16>, vector<784x256xbf16>, vector<16x256xf32> -> vector<16x256xf32>
    %c0_5 = arith.constant 0 : index
    %c0_6 = arith.constant 0 : index
    %32 = vector.load %arg4[%c0_5, %c0_6] : memref<1x256xf32, #tpu.memory_space<vmem>>, vector<1x256xf32>
    %33 = vector.broadcast %32 : vector<1x256xf32> to vector<16x256xf32>
    %34 = arith.addf %31, %33 : vector<16x256xf32>
    %cst_7 = arith.constant 0.000000e+00 : f32
    %35 = vector.broadcast %cst_7 : f32 to vector<16x256xf32>
    %36 = arith.maximumf %34, %35 : vector<16x256xf32>
    %37 = arith.truncf %36 : vector<16x256xf32> to vector<16x256xbf16>
    %38 = tpu.iota {dimensions = array<i32: 0>} : vector<16x256xi32>
    %39 = vector.broadcast %1 : i32 to vector<16x256xi32>
    %40 = arith.addi %38, %39 : vector<16x256xi32>
    %41 = tpu.iota {dimensions = array<i32: 1>} : vector<16x256xi32>
    %c-1640531535_i32_8 = arith.constant -1640531535 : i32
    %42 = vector.broadcast %c-1640531535_i32_8 : i32 to vector<16x256xi32>
    %43 = arith.muli %40, %42 : vector<16x256xi32>
    %c-2048144777_i32_9 = arith.constant -2048144777 : i32
    %44 = vector.broadcast %c-2048144777_i32_9 : i32 to vector<16x256xi32>
    %45 = arith.muli %41, %44 : vector<16x256xi32>
    %46 = arith.addi %43, %45 : vector<16x256xi32>
    %c-1028477387_i32_10 = arith.constant -1028477387 : i32
    %47 = arith.muli %0, %c-1028477387_i32_10 : i32
    %c1336530526_i32 = arith.constant 1336530526 : i32
    %48 = arith.addi %47, %c1336530526_i32 : i32
    %49 = vector.broadcast %48 : i32 to vector<16x256xi32>
    %50 = arith.xori %46, %49 : vector<16x256xi32>
    %c15_i32_11 = arith.constant 15 : i32
    %51 = vector.broadcast %c15_i32_11 : i32 to vector<16x256xi32>
    %52 = arith.shrui %50, %51 : vector<16x256xi32>
    %53 = arith.xori %50, %52 : vector<16x256xi32>
    %c739982445_i32_12 = arith.constant 739982445 : i32
    %54 = vector.broadcast %c739982445_i32_12 : i32 to vector<16x256xi32>
    %55 = arith.muli %53, %54 : vector<16x256xi32>
    %c12_i32_13 = arith.constant 12 : i32
    %56 = vector.broadcast %c12_i32_13 : i32 to vector<16x256xi32>
    %57 = arith.shrui %55, %56 : vector<16x256xi32>
    %58 = arith.xori %55, %57 : vector<16x256xi32>
    %c1_i32_14 = arith.constant 1 : i32
    %59 = vector.broadcast %c1_i32_14 : i32 to vector<16x256xi32>
    %60 = arith.shrui %58, %59 : vector<16x256xi32>
    %c429496730_i32 = arith.constant 429496730 : i32
    %61 = vector.broadcast %c429496730_i32 : i32 to vector<16x256xi32>
    %62 = arith.cmpi sge, %60, %61 : vector<16x256xi32>
    %cst_15 = arith.constant 0.000000e+00 : bf16
    %63 = vector.broadcast %cst_15 : bf16 to vector<16x256xbf16>
    %64 = arith.select %62, %37, %63 : vector<16x256xi1>, vector<16x256xbf16>
    %c0_16 = arith.constant 0 : index
    %c0_17 = arith.constant 0 : index
    %65 = vector.load %arg5[%c0_16, %c0_17] : memref<256x128xbf16, #tpu.memory_space<vmem>>, vector<256x128xbf16>
    %cst_18 = arith.constant dense<0.000000e+00> : vector<16x128xf32>
    %66 = tpu.matmul %64, %65, %cst_18 {dimension_numbers = #tpu.dot_dimension_numbers<[1], [0], [0], [1], [0, 0, 1, 1], [], []>} : vector<16x256xbf16>, vector<256x128xbf16>, vector<16x128xf32> -> vector<16x128xf32>
    %c0_19 = arith.constant 0 : index
    %c0_20 = arith.constant 0 : index
    %67 = vector.load %arg6[%c0_19, %c0_20] : memref<1x128xf32, #tpu.memory_space<vmem>>, vector<1x128xf32>
    %68 = vector.broadcast %67 : vector<1x128xf32> to vector<16x128xf32>
    %69 = arith.addf %66, %68 : vector<16x128xf32>
    %70 = arith.truncf %69 : vector<16x128xf32> to vector<16x128xbf16>
    %c0_21 = arith.constant 0 : index
    %c0_22 = arith.constant 0 : index
    %71 = vector.load %arg7[%c0_21, %c0_22] : memref<16x128xbf16, #tpu.memory_space<vmem>>, vector<16x128xbf16>
    tpu.vector_store %arg7[%c0_21, %c0_22], %70 {strides = array<i32>} : memref<16x128xbf16, #tpu.memory_space<vmem>>, vector<16x128xbf16>,
    return
  }
  func.func @transform_0(%arg0: i32, %arg1: memref<1xi32, #tpu.memory_space<smem>>) -> (i32, i32) {
    %c0_i32 = arith.constant 0 : i32
    %c0_i32_0 = arith.constant 0 : i32
    return %arg0, %c0_i32 : i32, i32
  }
  func.func @transform_1(%arg0: i32, %arg1: memref<1xi32, #tpu.memory_space<smem>>) -> (i32, i32) {
    %c0_i32 = arith.constant 0 : i32
    %c0_i32_0 = arith.constant 0 : i32
    %c0_i32_1 = arith.constant 0 : i32
    return %c0_i32, %c0_i32_0 : i32, i32
  }
  func.func @transform_2(%arg0: i32, %arg1: memref<1xi32, #tpu.memory_space<smem>>) -> (i32, i32) {
    %c0_i32 = arith.constant 0 : i32
    %c0_i32_0 = arith.constant 0 : i32
    %c0_i32_1 = arith.constant 0 : i32
    return %c0_i32, %c0_i32_0 : i32, i32
  }
  func.func @transform_3(%arg0: i32, %arg1: memref<1xi32, #tpu.memory_space<smem>>) -> (i32, i32) {
    %c0_i32 = arith.constant 0 : i32
    %c0_i32_0 = arith.constant 0 : i32
    %c0_i32_1 = arith.constant 0 : i32
    return %c0_i32, %c0_i32_0 : i32, i32
  }
  func.func @transform_4(%arg0: i32, %arg1: memref<1xi32, #tpu.memory_space<smem>>) -> (i32, i32) {
    %c0_i32 = arith.constant 0 : i32
    %c0_i32_0 = arith.constant 0 : i32
    %c0_i32_1 = arith.constant 0 : i32
    return %c0_i32, %c0_i32_0 : i32, i32
  }
  func.func @transform_5(%arg0: i32, %arg1: memref<1xi32, #tpu.memory_space<smem>>) -> (i32, i32) {
    %c0_i32 = arith.constant 0 : i32
    %c0_i32_0 = arith.constant 0 : i32
    return %arg0, %c0_i32 : i32, i32
  }
}

</mosaic_0001>

<bundles_post_ra>
// kernel: student_forward.1
= control target key start
LH: loop header
LB: loop body
LE: loop exit
PB: predicated region body
PF: predicated region fallthrough
CT: control target
= control target key end

     0   :  { %12 = vsyncpa [#allocation5], 0  ;;  %s2410_s0 = inlined_call_operand.<no memory space> [shape: s32[1], index: 0, kind: input, shape index: {}]   ;;  %s2411_s1 = inlined_call_operand.vmem [shape: bf16[2,784], index: 1, kind: input, shape index: {}]   ;;  %s2412_s2 = inlined_call_operand.hbm [shape: bf16[784,256], index: 2, kind: input, shape index: {}]   ;;  %s2413_s3 = inlined_call_operand.vmem [shape: f32[1,256], index: 3, kind: input, shape index: {}]   ;;  %s2414_s4 = inlined_call_operand.hbm [shape: bf16[256,128], index: 4, kind: input, shape index: {}]   ;;  %s2415_s5 = inlined_call_operand.vmem [shape: f32[1,128], index: 5, kind: input, shape index: {}]   ;;  %s2416_s6 = inlined_call_operand.vmem [shape: bf16[16,128], index: 6, kind: output, shape index: {}]  }
   0x1   :  { %13 = vsyncpa [#allocation7], 0  ;;  %s1970_s21 = smov [#allocation4]   ;;  %s1922_s25 = scalar_lea.hbm %s2412_s2, 12544 }
   0x2   :  { %s21_s22 = sshll.u32 %s1970_s21, 4  ;;  %p1923_p0 = scmp.ne.s32.totalorder %s2412_s2, %s1922_s25  ;;  %s22_s22 = int_to_ptr.vmem [resolvable:$true] %s21_s22 }
   0x3   :  { %p1926_p1 = scmp.lt.u32.totalorder %s1922_s25, %s2412_s2 }
   0x5   :  { %p1928_p2 = pnand %p1926_p1, %p1923_p0 }
   0x7   :  { %1931 = shalt.err (!%p1928_p2)
}
   0x8   :  { %s1932_s30 = scalar_lea.vmem %s22_s22, 12544  ;;  %p1937_p4 = scmp.lt.s32.totalorder %s22_s22, %s22_s22 }
   0x9   :  { %p1933_p3 = scmp.ne.s32.totalorder %s22_s22, %s1932_s30  ;;  %p1938_p5 = scmp.lt.s32.totalorder %s1932_s30, %s1932_s30 }
   0xb   :  { %p1939_p6 = por %p1938_p5, %p1937_p4 }
   0xd   :  { %p1940_p7 = pnand %p1939_p6, %p1933_p3 }
   0xf   :  { %1943 = shalt.err (!%p1940_p7)
}
  0x10   :  { %s1971_s7 = smov 128   ;;  %s1972_s8 = smov 8  }
  0x11   :  { %27 = dma.hbm_to_vmem [thread:$0]  %s2412_s2, 12544, %s22_s22, [#allocation5], %s1971_s7, %s1971_s7, %s1972_s8  }
  0x12   :  { %s1973_s11 = smov [#allocation6]   ;;  %s1944_s15 = scalar_lea.hbm %s2414_s4, 2048 }
  0x13   :  { %s35_s12 = sshll.u32 %s1973_s11, 4  ;;  %p1945_p8 = scmp.ne.s32.totalorder %s2414_s4, %s1944_s15  ;;  %s36_s12 = int_to_ptr.vmem [resolvable:$true] %s35_s12 }
  0x14   :  { %p1948_p9 = scmp.lt.u32.totalorder %s1944_s15, %s2414_s4 }
  0x16   :  { %p1950_p10 = pnand %p1948_p9, %p1945_p8 }
  0x18   :  { %1953 = shalt.err (!%p1950_p10)
}
  0x19   :  { %s1954_s20 = scalar_lea.vmem %s36_s12, 2048  ;;  %p1959_p12 = scmp.lt.s32.totalorder %s36_s12, %s36_s12 }
  0x1a   :  { %p1955_p11 = scmp.ne.s32.totalorder %s36_s12, %s1954_s20  ;;  %p1960_p13 = scmp.lt.s32.totalorder %s1954_s20, %s1954_s20 }
  0x1c   :  { %p1961_p0 = por %p1960_p13, %p1959_p12 }
  0x1e   :  { %p1962_p1 = pnand %p1961_p0, %p1955_p11 }
  0x20   :  { %1965 = shalt.err (!%p1962_p1)
}
  0x21   :  { %s1974_s2 = smov 64   ;;  %s1975_s21 = smov 4  }
  0x22   :  { %41 = dma.hbm_to_vmem [thread:$0]  %s2414_s4, 2048, %s36_s12, [#allocation7], %s1974_s2, %s1974_s2, %s1975_s21  }
  0x23   :  { %1966 = dma.done.wait [#allocation5], 12544  }
  0x24   :  { %1967 = vsyncadd [#allocation5], 4294954752 }
  0x25   :  { %1968 = dma.done.wait [#allocation7], 2048  }
  0x26   :  { %1969 = vsyncadd [#allocation7], 4294965248  ;;  %v62_v0 = vlaneseq  ;;  %s99_s26 = smul.u32 3266489909, %s2410_s0  ;;  %v1759_v6 = vld [vmem:[#allocation4 + $0x104] ss:$8 sps:$4 sm:$0xff]  }
  0x27   :  { %v1761_v8 = vld [vmem:[#allocation4 + $0x100] ss:$8 sps:$4 sm:$0xff]   ;;  %1222 = vmatprep.subr.bf16.mxu0 %v1759_v6  ;;  %v1762_v10 = vld [vmem:[#allocation4 + $0x114] ss:$8 sps:$4 sm:$0xff]   ;;  %v1764_v13 = vld [vmem:[#allocation4 + $0x110] ss:$8 sps:$4 sm:$0xff]  }
  0x28   :  { %v69_v1 = vand.u32 127, %v62_v0  ;;  %v2041_v2 = vshrl.u32 %v62_v0, 7  ;;  %s100_s4 = sadd.s32 668265263, %s99_s26  ;;  %1223 = vmatpush1.bf16.msra.mxu0 %v1761_v8  ;;  %v1765_v15 = vld [vmem:[#allocation4 + $0x124] ss:$8 sps:$4 sm:$0xff]  }
  0x29   :  { %1224 = vmatprep.subr.bf16.mxu0 %v1762_v10  ;;  %v2053_v21 = vstv %s100_s4  ;;  %v1767_v24 = vld [vmem:[#allocation4 + $0x120] ss:$8 sps:$4 sm:$0xff]   ;;  %v1768_v26 = vld [vmem:[#allocation4 + $0x134] ss:$8 sps:$4 sm:$0xff]   ;;  %v1770_v34 = vld [vmem:[#allocation4 + $0x130] ss:$8 sps:$4 sm:$0xff]  }
  0x2a   :  { %v70_v3 = vadd.s32 128, %v69_v1  ;;  %v71_v4 = vadd.s32 256, %v69_v1  ;;  %v76_v5 = vmul.u32 2654435761, %v2041_v2  ;;  %v78_v7 = vmul.u32 2246822519, %v69_v1 }
  0x2b   :  { %v72_v11 = vadd.s32 384, %v69_v1  ;;  %v73_v12 = vadd.s32 512, %v69_v1  ;;  %v64_v14 = vadd.s32 8, %v2041_v2  ;;  %v74_v18 = vadd.s32 640, %v69_v1  ;;  %v1771_v36 = vld [vmem:[#allocation4 + $0x144] ss:$8 sps:$4 sm:$0xff]  }
  0x2c   :  { %v79_v9 = vmul.u32 2246822519, %v70_v3  ;;  %v80_v16 = vmul.u32 2246822519, %v71_v4  ;;  %v2049_v17 = vadd.s32 %v78_v7, %v76_v5  ;;  %v75_v19 = vadd.s32 768, %v69_v1  ;;  %1225 = vmatpush1.bf16.msra.mxu0 %v1764_v13 }
  0x2d   :  { %v81_v22 = vmul.u32 2246822519, %v72_v11  ;;  %v82_v23 = vmul.u32 2246822519, %v73_v12  ;;  %1226 = vmatprep.subr.bf16.mxu0 %v1765_v15  ;;  %v1773_v46 = vld [vmem:[#allocation4 + $0x140] ss:$8 sps:$4 sm:$0xff]  }
  0x2e   :  { %v2051_v20 = vadd.s32 %v79_v9, %v76_v5  ;;  %v77_v25 = vmul.u32 2654435761, %v64_v14  ;;  %v87_v27 = vadd.s32 %v80_v16, %v76_v5  ;;  %v102_v28 = vxor.u32 %v2053_v21, %v2049_v17  ;;  %v1774_v51 = vld [vmem:[#allocation4 + $0x154] ss:$8 sps:$4 sm:$0xff]   ;;  %v1776_v56 = vld [vmem:[#allocation4 + $0x150] ss:$8 sps:$4 sm:$0xff]  }
  0x2f   :  { %v83_v29 = vmul.u32 2246822519, %v74_v18  ;;  %v84_v30 = vmul.u32 2246822519, %v75_v19  ;;  %v88_v32 = vadd.s32 %v81_v22, %v76_v5  ;;  %v89_v33 = vadd.s32 %v82_v23, %v76_v5  ;;  %v1777_v61 = vld [vmem:[#allocation4 + $0x164] ss:$8 sps:$4 sm:$0xff]  }
  0x30   :  { %v103_v31 = vxor.u32 %v2053_v21, %v2051_v20  ;;  %1227 = vmatpush1.bf16.msra.mxu0 %v1767_v24  ;;  %v2059_v35 = vadd.s32 %v78_v7, %v77_v25  ;;  %v2061_v37 = vadd.s32 %v79_v9, %v77_v25  ;;  %v94_v38 = vadd.s32 %v80_v16, %v77_v25  ;;  %v1801_v0 = vld [vmem:[#allocation4 + $0x4] ss:$8 sps:$4 sm:$0xff]   ;;  %v1803_v1 = vld [vmem:[#allocation4] ss:$8 sps:$4 sm:$0xff]   ;;  %v1780_v16 = vld [vmem:[#allocation4 + $0x174] ss:$8 sps:$4 sm:$0xff]  }
  0x31   :  { %1228 = vmatprep.subr.bf16.mxu0 %v1768_v26  ;;  %v104_v39 = vxor.u32 %v2053_v21, %v87_v27  ;;  %v116_v40 = vshrl.u32 %v102_v28, 15  ;;  %v90_v41 = vadd.s32 %v83_v29, %v76_v5  ;;  %v91_v42 = vadd.s32 %v84_v30, %v76_v5  ;;  %v1779_v11 = vld [vmem:[#allocation4 + $0x160] ss:$8 sps:$4 sm:$0xff]   ;;  %1179 = vmatprep.subr.bf16.mxu1 %v1801_v0  ;;  %v1807_v18 = vld [vmem:[#allocation4 + $0x14] ss:$8 sps:$4 sm:$0xff]  }
  0x32   :  { %v117_v43 = vshrl.u32 %v103_v31, 15  ;;  %v105_v44 = vxor.u32 %v2053_v21, %v88_v32  ;;  %v106_v45 = vxor.u32 %v2053_v21, %v89_v33  ;;  %v95_v47 = vadd.s32 %v81_v22, %v77_v25  ;;  %1180 = vmatpush1.bf16.msra.mxu1 %v1803_v1  ;;  %v1809_v19 = vld [vmem:[#allocation4 + $0x10] ss:$8 sps:$4 sm:$0xff]   ;;  %s1357_s21 = sadd.s32 1336530526, %s99_s26 }
  0x33   :  { %v96_v48 = vadd.s32 %v82_v23, %v77_v25  ;;  %v97_v49 = vadd.s32 %v83_v29, %v77_v25  ;;  %v109_v50 = vxor.u32 %v2053_v21, %v2059_v35  ;;  %v110_v52 = vxor.u32 %v2053_v21, %v2061_v37  ;;  %1181 = vmatprep.subr.bf16.mxu1 %v1807_v18 }
  0x34   :  { %1229 = vmatpush1.bf16.msra.mxu0 %v1770_v34  ;;  %v111_v53 = vxor.u32 %v2053_v21, %v94_v38  ;;  %v118_v54 = vshrl.u32 %v104_v39, 15  ;;  %v130_v55 = vxor.u32 %v116_v40, %v102_v28  ;;  %v98_v57 = vadd.s32 %v84_v30, %v77_v25 }
  0x35   :  { %1230 = vmatprep.subr.bf16.mxu0 %v1771_v36  ;;  %v107_v58 = vxor.u32 %v2053_v21, %v90_v41  ;;  %v108_v59 = vxor.u32 %v2053_v21, %v91_v42  ;;  %v131_v60 = vxor.u32 %v117_v43, %v103_v31  ;;  %v119_v62 = vshrl.u32 %v105_v44, 15  ;;  %v1815_v41 = vld [vmem:[#allocation4 + $0x20] ss:$8 sps:$4 sm:$0xff]  }
  0x36   :  { %v120_v63 = vshrl.u32 %v106_v45, 15  ;;  %v112_v3 = vxor.u32 %v2053_v21, %v95_v47  ;;  %v113_v4 = vxor.u32 %v2053_v21, %v96_v48  ;;  %v114_v5 = vxor.u32 %v2053_v21, %v97_v49  ;;  %1182 = vmatpush1.bf16.msra.mxu1 %v1809_v19  ;;  %v1782_v48 = vld [vmem:[#allocation4 + $0x170] ss:$8 sps:$4 sm:$0xff]  }
  0x37   :  { %v123_v6 = vshrl.u32 %v109_v50, 15  ;;  %v124_v7 = vshrl.u32 %v110_v52, 15  ;;  %v125_v8 = vshrl.u32 %v111_v53, 15  ;;  %v2076_v9 = vxor.u32 %v118_v54, %v104_v39 }
  0x38   :  { %1231 = vmatpush1.bf16.msra.mxu0 %v1773_v46  ;;  %v144_v10 = vmul.u32 739982445, %v130_v55  ;;  %v115_v12 = vxor.u32 %v2053_v21, %v98_v57  ;;  %v121_v13 = vshrl.u32 %v107_v58, 15  ;;  %v122_v14 = vshrl.u32 %v108_v59, 15  ;;  %v1813_v21 = vld [vmem:[#allocation4 + $0x24] ss:$8 sps:$4 sm:$0xff]  }
  0x39   :  { %1232 = vmatprep.subr.bf16.mxu0 %v1774_v51  ;;  %v145_v15 = vmul.u32 739982445, %v131_v60  ;;  %v1976_v23 = vmov 1983009808   ;;  %v1977_v25 = vmov 1966171168   ;;  %v133_v31 = vxor.u32 %v119_v62, %v105_v44  ;;  %1183 = vmatprep.subr.bf16.mxu1 %v1813_v21 }
  0x3a   :  { %v158_v22 = vshrl.u32 %v144_v10, 12  ;;  %v2079_v24 = vunpack.c.l.s4 %v1976_v23  ;;  %v2081_v26 = vunpack.c.l.s4 %v1977_v25  ;;  %v126_v27 = vshrl.u32 %v112_v3, 15  ;;  %v1783_v44 = vld [vmem:[#allocation4 + $0x184] ss:$8 sps:$4 sm:$0xff]   ;;  %1184 = vmatpush1.bf16.msra.mxu1 %v1815_v41 }
  0x3b   :  { %v127_v28 = vshrl.u32 %v113_v4, 15  ;;  %v128_v29 = vshrl.u32 %v114_v5, 15  ;;  %v159_v30 = vshrl.u32 %v145_v15, 12  ;;  %v134_v32 = vxor.u32 %v120_v63, %v106_v45  ;;  %v1789_v21 = vld [vmem:[#allocation4 + $0x1a4] ss:$8 sps:$4 sm:$0xff]  }
  0x3c   :  { %1233 = vmatpush1.bf16.msra.mxu0 %v1776_v56  ;;  %v146_v33 = vmul.u32 739982445, %v2076_v9  ;;  %v2084_v34 = vxor.u32 %v158_v22, %v144_v10  ;;  %v129_v36 = vshrl.u32 %v115_v12, 15  ;;  %v135_v38 = vxor.u32 %v121_v13, %v107_v58 }
  0x3d   :  { %1234 = vmatprep.subr.bf16.mxu0 %v1777_v61  ;;  %v136_v39 = vxor.u32 %v122_v14, %v108_v59  ;;  %v2086_v40 = vxor.u32 %v159_v30, %v145_v15  ;;  %v137_v42 = vxor.u32 %v123_v6, %v109_v50  ;;  %v138_v43 = vxor.u32 %v124_v7, %v110_v52  ;;  %v1785_v50 = vld [vmem:[#allocation4 + $0x180] ss:$8 sps:$4 sm:$0xff]   ;;  %v1786_v61 = vld [vmem:[#allocation4 + $0x194] ss:$8 sps:$4 sm:$0xff]   ;;  %v1788_v15 = vld [vmem:[#allocation4 + $0x190] ss:$8 sps:$4 sm:$0xff]  }
  0x3e   :  { %v139_v46 = vxor.u32 %v125_v8, %v111_v53  ;;  %v234_v47 = vunpack.c.0.s8 %v2079_v24  ;;  %v140_v45 = vxor.u32 %v126_v27, %v112_v3  ;;  %v141_v49 = vxor.u32 %v127_v28, %v113_v4  ;;  %v1821_v30 = vld [vmem:[#allocation4 + $0x30] ss:$8 sps:$4 sm:$0xff]  }
  0x3f   :  { %v142_v51 = vxor.u32 %v128_v29, %v114_v5  ;;  %v554_v54 = vunpack.c.0.s8 %v2081_v26  ;;  %v147_v55 = vmul.u32 739982445, %v133_v31  ;;  %v148_v56 = vmul.u32 739982445, %v134_v32  ;;  %v1819_v29 = vld [vmem:[#allocation4 + $0x34] ss:$8 sps:$4 sm:$0xff]  }
  0x40   :  { %1235 = vmatpush1.bf16.msra.mxu0 %v1779_v11  ;;  %v160_v57 = vshrl.u32 %v146_v33, 12  ;;  %v186_v58 = vshrl.u32 %v2084_v34, 1  ;;  %v143_v52 = vxor.u32 %v129_v36, %v115_v12  ;;  %v149_v53 = vmul.u32 739982445, %v135_v38  ;;  %1185 = vmatprep.subr.bf16.mxu1 %v1819_v29  ;;  %v1797_v26 = vld [vmem:[#allocation4 + $0x1c0] ss:$8 sps:$4 sm:$0xff]  }
  0x41   :  { %1236 = vmatprep.subr.bf16.mxu0 %v1780_v16  ;;  %v150_v59 = vmul.u32 739982445, %v136_v39  ;;  %v187_v60 = vshrl.u32 %v2086_v40, 1  ;;  %v151_v62 = vmul.u32 739982445, %v137_v42  ;;  %v161_v0 = vshrl.u32 %v147_v55, 12  ;;  %1186 = vmatpush1.bf16.msra.mxu1 %v1821_v30 }
  0x42   :  { %v152_v63 = vmul.u32 739982445, %v138_v43  ;;  %v162_v1 = vshrl.u32 %v148_v56, 12  ;;  %v153_v3 = vmul.u32 739982445, %v139_v46  ;;  %v163_v5 = vshrl.u32 %v149_v53, 12 }
  0x43   :  { %v154_v4 = vmul.u32 739982445, %v140_v45  ;;  %v164_v6 = vshrl.u32 %v150_v59, 12  ;;  %v155_v7 = vmul.u32 739982445, %v141_v49  ;;  %v165_v9 = vshrl.u32 %v151_v62, 12 }
  0x44   :  { %1237 = vmatpush1.bf16.msra.mxu0 %v1782_v48  ;;  %v156_v8 = vmul.u32 739982445, %v142_v51  ;;  %v166_v10 = vshrl.u32 %v152_v63, 12  ;;  %v157_v11 = vmul.u32 739982445, %v143_v52  ;;  %v167_v12 = vshrl.u32 %v153_v3, 12 }
  0x45   :  { %1238 = vmatprep.subr.bf16.mxu0 %v1783_v44  ;;  %v168_v13 = vshrl.u32 %v154_v4, 12  ;;  %v174_v14 = vxor.u32 %v160_v57, %v146_v33  ;;  %v169_v16 = vshrl.u32 %v155_v7, 12  ;;  %v175_v19 = vxor.u32 %v161_v0, %v147_v55  ;;  %v1791_v39 = vld [vmem:[#allocation4 + $0x1a0] ss:$8 sps:$4 sm:$0xff]   ;;  %v1792_v43 = vld [vmem:[#allocation4 + $0x1b4] ss:$8 sps:$4 sm:$0xff]  }
  0x46   :  { %v170_v18 = vshrl.u32 %v156_v8, 12  ;;  %v176_v22 = vxor.u32 %v162_v1, %v148_v56  ;;  %v171_v23 = vshrl.u32 %v157_v11, 12  ;;  %v177_v25 = vxor.u32 %v163_v5, %v149_v53  ;;  %v1825_v49 = vld [vmem:[#allocation4 + $0x44] ss:$8 sps:$4 sm:$0xff]   ;;  %v1843_v1 = vld [vmem:[#allocation4 + $0x74] ss:$8 sps:$4 sm:$0xff]  }
  0x47   :  { %v178_v27 = vxor.u32 %v164_v6, %v150_v59  ;;  %v179_v28 = vxor.u32 %v165_v9, %v151_v62  ;;  %v180_v31 = vxor.u32 %v166_v10, %v152_v63  ;;  %v181_v32 = vxor.u32 %v167_v12, %v153_v3  ;;  %1187 = vmatprep.subr.bf16.mxu1 %v1825_v49  ;;  %v1794_v62 = vld [vmem:[#allocation4 + $0x1b0] ss:$8 sps:$4 sm:$0xff]   ;;  %v1839_v63 = vld [vmem:[#allocation4 + $0x60] ss:$8 sps:$4 sm:$0xff]   ;;  %v1810_v9 = vld [vmem:[#allocation4 + $0x1f4] ss:$8 sps:$4 sm:$0xff]  }
  0x48   :  { %1239 = vmatpush1.bf16.msra.mxu0 %v1785_v50  ;;  %v182_v36 = vxor.u32 %v168_v13, %v154_v4  ;;  %v183_v38 = vxor.u32 %v169_v16, %v155_v7  ;;  %v184_v33 = vxor.u32 %v170_v18, %v156_v8  ;;  %v185_v40 = vxor.u32 %v171_v23, %v157_v11  ;;  %v1827_v50 = vld [vmem:[#allocation4 + $0x40] ss:$8 sps:$4 sm:$0xff]  }
  0x49   :  { %1240 = vmatprep.subr.bf16.mxu0 %v1786_v61  ;;  %v188_v41 = vshrl.u32 %v174_v14, 1  ;;  %v189_v42 = vshrl.u32 %v175_v19, 1  ;;  %v190_v46 = vshrl.u32 %v176_v22, 1  ;;  %v191_v48 = vshrl.u32 %v177_v25, 1  ;;  %1188 = vmatpush1.bf16.msra.mxu1 %v1827_v50  ;;  %v1798_v19 = vld [vmem:[#allocation4 + $0x1d4] ss:$8 sps:$4 sm:$0xff]  }
  0x4a   :  { %v192_v44 = vshrl.u32 %v178_v27, 1  ;;  %v193_v45 = vshrl.u32 %v179_v28, 1  ;;  %v194_v51 = vshrl.u32 %v180_v31, 1  ;;  %v195_v55 = vshrl.u32 %v181_v32, 1  ;;  %v1831_v31 = vld [vmem:[#allocation4 + $0x54] ss:$8 sps:$4 sm:$0xff]  }
  0x4b   :  { %v196_v56 = vshrl.u32 %v182_v36, 1  ;;  %v197_v57 = vshrl.u32 %v183_v38, 1  ;;  %v198_v52 = vshrl.u32 %v184_v33, 1  ;;  %v199_v53 = vshrl.u32 %v185_v40, 1  ;;  %v1833_v33 = vld [vmem:[#allocation4 + $0x50] ss:$8 sps:$4 sm:$0xff]   ;;  %1189 = vmatprep.subr.bf16.mxu1 %v1831_v31 }
  0x4c   :  { %1241 = vmatpush1.bf16.msra.mxu0 %v1788_v15  ;;  %vm2094_vm0 = vcmp.ge.s32.totalorder %v186_v58, 214748365  ;;  %vm2098_vm1 = vcmp.ge.s32.totalorder %v187_v60, 214748365  ;;  %vm2102_vm2 = vcmp.ge.s32.totalorder %v188_v41, 214748365  ;;  %v2141_v7 = vsub.s32 %v234_v47, %v2041_v2 }
  0x4d   :  { %1242 = vmatprep.subr.bf16.mxu0 %v1789_v21  ;;  %vm2106_vm3 = vcmp.ge.s32.totalorder %v189_v42, 214748365  ;;  %vm2110_vm4 = vcmp.ge.s32.totalorder %v190_v46, 214748365  ;;  %v1795_v58 = vld [vmem:[#allocation4 + $0x1c4] ss:$8 sps:$4 sm:$0xff]   ;;  %v2158_v11 = vsub.s32 %v554_v54, %v2041_v2  ;;  %1190 = vmatpush1.bf16.msra.mxu1 %v1833_v33 }
  0x4e   :  { %vm2114_vm5 = vcmp.ge.s32.totalorder %v191_v48, 214748365  ;;  %vm2118_vm6 = vcmp.ge.s32.totalorder %v192_v44, 214748365  ;;  %vm2122_vm7 = vcmp.ge.s32.totalorder %v193_v45, 214748365 }
  0x4f   :  { %vm2126_vm8 = vcmp.ge.s32.totalorder %v194_v51, 214748365  ;;  %vm2130_vm9 = vcmp.ge.s32.totalorder %v195_v55, 214748365  ;;  %vm2134_vm10 = vcmp.ge.s32.totalorder %v196_v56, 214748365 }
  0x50   :  { %1243 = vmatpush1.bf16.msra.mxu0 %v1791_v39  ;;  %vm2143_vm11 = vcmp.ge.s32.totalorder %v197_v57, 214748365  ;;  %vm2147_vm12 = vcmp.ge.s32.totalorder %v198_v52, 214748365  ;;  %vm2151_vm13 = vcmp.ge.s32.totalorder %v199_v53, 214748365 }
  0x51   :  { %1244 = vmatprep.subr.bf16.mxu0 %v1792_v43  ;;  %v1978_v24 = vmov 0   ;;  %v1800_v46 = vld [vmem:[#allocation4 + $0x1d0] ss:$8 sps:$4 sm:$0xff]   ;;  %v1837_v51 = vld [vmem:[#allocation4 + $0x64] ss:$8 sps:$4 sm:$0xff]  }
  0x52   :  { %v214_v47 = vsel %vm2094_vm0, 1, %v1978_v24  ;;  %v215_v12 = vsel %vm2098_vm1, 1, %v1978_v24  ;;  %v216_v13 = vsel %vm2102_vm2, 1, %v1978_v24  ;;  %v217_v14 = vsel %vm2106_vm3, 1, %v1978_v24  ;;  %v1804_v55 = vld [vmem:[#allocation4 + $0x1e4] ss:$8 sps:$4 sm:$0xff]   ;;  %1191 = vmatprep.subr.bf16.mxu1 %v1837_v51 }
  0x53   :  { %v218_v54 = vsel %vm2110_vm4, 1, %v1978_v24  ;;  %v219_v15 = vsel %vm2114_vm5, 1, %v1978_v24  ;;  %v220_v16 = vsel %vm2118_vm6, 1, %v1978_v24  ;;  %v221_v18 = vsel %vm2122_vm7, 1, %v1978_v24  ;;  %v1806_v3 = vld [vmem:[#allocation4 + $0x1e0] ss:$8 sps:$4 sm:$0xff]   ;;  %1192 = vmatpush1.bf16.msra.mxu1 %v1839_v63 }
  0x54   :  { %1245 = vmatpush1.bf16.msra.mxu0 %v1794_v62  ;;  %v222_v22 = vsel %vm2126_vm8, 1, %v1978_v24  ;;  %v223_v23 = vsel %vm2130_vm9, 1, %v1978_v24  ;;  %v224_v25 = vsel %vm2134_vm10, 1, %v1978_v24  ;;  %v225_v27 = vsel %vm2143_vm11, 1, %v1978_v24  ;;  %1193 = vmatprep.subr.bf16.mxu1 %v1843_v1  ;;  %v1869_v33 = vld [vmem:[#allocation4 + $0xb0] ss:$8 sps:$4 sm:$0xff]  }
  0x55   :  { %1246 = vmatprep.subr.bf16.mxu0 %v1795_v58  ;;  %v226_v28 = vsel %vm2147_vm12, 1, %v1978_v24  ;;  %v227_v29 = vsel %vm2151_vm13, 1, %v1978_v24  ;;  %v228_v30 = vcombine.low %v214_v47, %v215_v12  ;;  %v229_v21 = vcombine.high %v214_v47, %v215_v12 }
  0x56   :  { %v230_v32 = vcombine.low %v216_v13, %v217_v14  ;;  %v231_v36 = vcombine.high %v216_v13, %v217_v14  ;;  %v264_v38 = vcombine.low %v218_v54, %v219_v15  ;;  %v265_v39 = vcombine.high %v218_v54, %v219_v15 }
  0x57   :  { %v238_v40 = vrot.slane %v228_v30, %v2141_v7  ;;  %v2204_v41 = vrot.slane %v229_v21, %v2141_v7  ;;  %v266_v42 = vcombine.high %v220_v16, %v220_v16  ;;  %v287_v43 = vrot.slane %v220_v16, %v2141_v7  ;;  %v1845_v16 = vld [vmem:[#allocation4 + $0x70] ss:$8 sps:$4 sm:$0xff]  }
  0x58   :  { %1247 = vmatpush1.bf16.msra.mxu0 %v1797_v26  ;;  %v252_v48 = vrot.slane %v230_v32, %v2141_v7  ;;  %v259_v44 = vrot.slane %v231_v36, %v2141_v7  ;;  %v273_v45 = vrot.slane %v264_v38, %v2141_v7  ;;  %v280_v49 = vrot.slane %v265_v39, %v2141_v7  ;;  %v1818_v38 = vld [vmem:[#allocation4 + $0x204] ss:$8 sps:$4 sm:$0xff]   ;;  %v1851_v39 = vld [vmem:[#allocation4 + $0x80] ss:$8 sps:$4 sm:$0xff]  }
  0x59   :  { %1248 = vmatprep.subr.bf16.mxu0 %v1798_v19  ;;  %v294_v56 = vrot.slane %v266_v42, %v2141_v7  ;;  %v299_v57 = vcombine.low %v221_v18, %v222_v22  ;;  %v300_v50 = vcombine.high %v221_v18, %v222_v22  ;;  %v301_v52 = vcombine.low %v223_v23, %v224_v25 }
  0x5a   :  { %v260_v53 = vcombine.low %v238_v40, %v252_v48  ;;  %v261_v59 = vcombine.high %v238_v40, %v252_v48  ;;  %v262_v61 = vcombine.low %v2204_v41, %v259_v44  ;;  %v263_v62 = vcombine.high %v2204_v41, %v259_v44  ;;  %1194 = vmatpush1.bf16.msra.mxu1 %v1845_v16 }
  0x5b   :  { %v295_v0 = vcombine.low %v273_v45, %v287_v43  ;;  %v296_v34 = vcombine.high %v273_v45, %v287_v43  ;;  %v297_v58 = vcombine.low %v280_v49, %v294_v56  ;;  %v298_v60 = vcombine.high %v280_v49, %v294_v56  ;;  %v1855_v43 = vld [vmem:[#allocation4 + $0x94] ss:$8 sps:$4 sm:$0xff]  }
  0x5c   :  { %1249 = vmatpush1.bf16.msra.mxu0 %v1800_v46  ;;  %v302_v4 = vcombine.high %v223_v23, %v224_v25  ;;  %v309_v5 = vrot.slane %v299_v57, %v2141_v7  ;;  %v316_v6 = vrot.slane %v300_v50, %v2141_v7  ;;  %v323_v8 = vrot.slane %v301_v52, %v2141_v7  ;;  %v1849_v25 = vld [vmem:[#allocation4 + $0x84] ss:$8 sps:$4 sm:$0xff]  }
  0x5d   :  { %1250 = vmatprep.subr.bf16.mxu0 %v1804_v55  ;;  %v335_v10 = vcombine.low %v225_v27, %v226_v28  ;;  %v336_v47 = vcombine.high %v225_v27, %v226_v28  ;;  %v337_v12 = vcombine.high %v227_v29, %v227_v29  ;;  %v358_v13 = vrot.slane %v227_v29, %v2141_v7  ;;  %v1812_v27 = vld [vmem:[#allocation4 + $0x1f0] ss:$8 sps:$4 sm:$0xff]   ;;  %v1873_v46 = vld [vmem:[#allocation4 + $0xc4] ss:$8 sps:$4 sm:$0xff]  }
  0x5e   :  { %v330_v14 = vrot.slane %v302_v4, %v2141_v7  ;;  %v331_v26 = vcombine.low %v309_v5, %v323_v8  ;;  %v332_v54 = vcombine.high %v309_v5, %v323_v8  ;;  %vm2219_vm14 = vcmp.ne.s32.totalorder %v260_v53, 0  ;;  %1195 = vmatprep.subr.bf16.mxu1 %v1849_v25  ;;  %v54_v4 = vld [vmem:[%s2411_s1] sm:$0x7f]  ;;  %v55_v5 = vld [vmem:[%s2411_s1 + $0x7] sm:$0x7f] }
  0x5f   :  { %v344_v18 = vrot.slane %v335_v10, %v2141_v7  ;;  %v351_v19 = vrot.slane %v336_v47, %v2141_v7  ;;  %v365_v22 = vrot.slane %v337_v12, %v2141_v7  ;;  %vm2226_vm15 = vcmp.ne.s32.totalorder %v295_v0, 0  ;;  %1196 = vmatpush1.bf16.msra.mxu1 %v1851_v39  ;;  %v57_v8 = vld [vmem:[%s2411_s1 + $0x15] sm:$0x7f] }
  0x60   :  { %1251 = vmatpush1.bf16.msra.mxu0 %v1806_v3  ;;  %v333_v28 = vcombine.low %v316_v6, %v330_v14  ;;  %v334_v29 = vcombine.high %v316_v6, %v330_v14  ;;  %vm2230_vm0 = vcmp.ne.s32.totalorder %v261_v59, 0  ;;  %vm2234_vm1 = vcmp.ne.s32.totalorder %v296_v34, 0  ;;  %v1857_v59 = vld [vmem:[#allocation4 + $0x90] ss:$8 sps:$4 sm:$0xff]   ;;  %1197 = vmatprep.subr.bf16.mxu1 %v1855_v43  ;;  %v1861_v3 = vld [vmem:[#allocation4 + $0xa4] ss:$8 sps:$4 sm:$0xff]  }
  0x61   :  { %1252 = vmatprep.subr.bf16.mxu0 %v1810_v9  ;;  %v366_v7 = vcombine.low %v344_v18, %v358_v13  ;;  %v367_v31 = vcombine.high %v344_v18, %v358_v13  ;;  %v368_v32 = vcombine.low %v351_v19, %v365_v22  ;;  %v369_v36 = vcombine.high %v351_v19, %v365_v22  ;;  %v56_v6 = vld [vmem:[%s2411_s1 + $0xe] sm:$0x7f]  ;;  %v58_v13 = vld [vmem:[%s2411_s1 + $0x1c] sm:$0x7f]  ;;  %v59_v14 = vld [vmem:[%s2411_s1 + $0x23] sm:$0x7f] }
  0x62   :  { %vm2238_vm2 = vcmp.ne.s32.totalorder %v262_v61, 0  ;;  %vm2242_vm3 = vcmp.ne.s32.totalorder %v297_v58, 0  ;;  %vm2246_vm4 = vcmp.ne.s32.totalorder %v263_v62, 0  ;;  %vm2250_vm5 = vcmp.ne.s32.totalorder %v298_v60, 0 }
  0x63   :  { %vm2254_vm6 = vcmp.ne.s32.totalorder %v331_v26, 0  ;;  %vm2258_vm7 = vcmp.ne.s32.totalorder %v366_v7, 0  ;;  %vm2262_vm8 = vcmp.ne.s32.totalorder %v332_v54, 0  ;;  %vm2266_vm9 = vcmp.ne.s32.totalorder %v367_v31, 0  ;;  %v60_v26 = vld [vmem:[%s2411_s1 + $0x2a] sm:$0x7f]  ;;  %1198 = vmatpush1.bf16.msra.mxu1 %v1857_v59 }
  0x64   :  { %1253 = vmatpush1.bf16.msra.mxu0 %v1812_v27  ;;  %vm2270_vm10 = vcmp.ne.s32.totalorder %v333_v28, 0  ;;  %vm2274_vm11 = vcmp.ne.s32.totalorder %v368_v32, 0  ;;  %vm2278_vm12 = vcmp.ne.s32.totalorder %v334_v29, 0  ;;  %vm2282_vm13 = vcmp.ne.s32.totalorder %v369_v36, 0  ;;  %v61_v54 = vld [vmem:[%s2411_s1 + $0x31] sm:$0x7f]  ;;  %1199 = vmatprep.subr.bf16.mxu1 %v1861_v3 }
  0x65   :  { %v386_v57 = vsel %vm2219_vm14, 1, %v1978_v24  ;;  %v387_v50 = vsel %vm2226_vm15, 1, %v1978_v24  ;;  %v388_v52 = vsel %vm2230_vm0, 1, %v1978_v24  ;;  %v389_v53 = vsel %vm2234_vm1, 1, %v1978_v24  ;;  %1265 = vmatprep.subr.bf16.mxu0 %v1818_v38  ;;  %v1863_v28 = vld [vmem:[#allocation4 + $0xa0] ss:$8 sps:$4 sm:$0xff]  }
  0x66   :  { %v390_v61 = vsel %vm2238_vm2, 1, %v1978_v24  ;;  %v391_v62 = vsel %vm2242_vm3, 1, %v1978_v24  ;;  %v392_v63 = vsel %vm2246_vm4, 1, %v1978_v24  ;;  %v393_v0 = vsel %vm2250_vm5, 1, %v1978_v24  ;;  %v1867_v29 = vld [vmem:[#allocation4 + $0xb4] ss:$8 sps:$4 sm:$0xff]  }
  0x67   :  { %v394_v34 = vsel %vm2254_vm6, 1, %v1978_v24  ;;  %v395_v58 = vsel %vm2258_vm7, 1, %v1978_v24  ;;  %v396_v60 = vsel %vm2262_vm8, 1, %v1978_v24  ;;  %v397_v1 = vsel %vm2266_vm9, 1, %v1978_v24  ;;  %1200 = vmatpush1.bf16.msra.mxu1 %v1863_v28  ;;  %v1836_v28 = vld [vmem:[#allocation4 + $0x234] ss:$8 sps:$4 sm:$0xff]  }
  0x68   :  { %v398_v9 = vsel %vm2270_vm10, 1, %v1978_v24  ;;  %v399_v10 = vsel %vm2274_vm11, 1, %v1978_v24  ;;  %v400_v47 = vsel %vm2278_vm12, 1, %v1978_v24  ;;  %v401_v12 = vsel %vm2282_vm13, 1, %v1978_v24  ;;  %1201 = vmatprep.subr.bf16.mxu1 %v1867_v29 }
  0x69   :  { %v402_v15 = vpack.c.b16 %v387_v50, %v386_v57  ;;  %v403_v16 = vpack.c.b16 %v389_v53, %v388_v52  ;;  %v404_v18 = vpack.c.b16 %v391_v62, %v390_v61  ;;  %v405_v19 = vpack.c.b16 %v393_v0, %v392_v63  ;;  %v1875_v53 = vld [vmem:[#allocation4 + $0xc0] ss:$8 sps:$4 sm:$0xff]   ;;  %v1879_v0 = vld [vmem:[#allocation4 + $0xd4] ss:$8 sps:$4 sm:$0xff]  }
  0x6a   :  { %v406_v22 = vpack.c.b16 %v395_v58, %v394_v34  ;;  %v407_v23 = vpack.c.b16 %v397_v1, %v396_v60  ;;  %v408_v25 = vpack.c.b16 %v399_v10, %v398_v9  ;;  %v409_v27 = vpack.c.b16 %v401_v12, %v400_v47  ;;  %v1881_v9 = vld [vmem:[#allocation4 + $0xd0] ss:$8 sps:$4 sm:$0xff]   ;;  %v1885_v47 = vld [vmem:[#allocation4 + $0xe4] ss:$8 sps:$4 sm:$0xff]  }
  0x6b   :  { %vm410_vm14 = vcmp.ne.s16.totalorder %v402_v15, 0  ;;  %vm411_vm15 = vcmp.ne.s16.totalorder %v403_v16, 0  ;;  %vm412_vm0 = vcmp.ne.s16.totalorder %v404_v18, 0  ;;  %vm413_vm1 = vcmp.ne.s16.totalorder %v405_v19, 0  ;;  %1202 = vmatpush1.bf16.msra.mxu1 %v1869_v33  ;;  %v1887_v16 = vld [vmem:[#allocation4 + $0xe0] ss:$8 sps:$4 sm:$0xff]  }
  0x6c   :  { %vm414_vm2 = vcmp.ne.s16.totalorder %v406_v22, 0  ;;  %vm415_vm3 = vcmp.ne.s16.totalorder %v407_v23, 0  ;;  %vm416_vm4 = vcmp.ne.s16.totalorder %v408_v25, 0  ;;  %vm417_vm5 = vcmp.ne.s16.totalorder %v409_v27, 0  ;;  %1203 = vmatprep.subr.bf16.mxu1 %v1873_v46  ;;  %v1891_v18 = vld [vmem:[#allocation4 + $0xf4] ss:$8 sps:$4 sm:$0xff]  }
  0x6d   :  { %v418_v30 = vsel %vm410_vm14, %v54_v4, 0  ;;  %v419_v21 = vsel %vm411_vm15, %v55_v5, 0  ;;  %v420_v7 = vsel %vm412_vm0, %v56_v6, 0  ;;  %v421_v31 = vsel %vm413_vm1, %v57_v8, 0  ;;  %v1822_v19 = vld [vmem:[#allocation4 + $0x210] ss:$8 sps:$4 sm:$0xff]  }
  0x6e   :  { %v422_v32 = vsel %vm414_vm2, %v58_v13, 0  ;;  %v423_v36 = vsel %vm415_vm3, %v59_v14, 0  ;;  %v424_v38 = vsel %vm416_vm4, %v60_v26, 0  ;;  %v425_v39 = vsel %vm417_vm5, %v61_v54, 0  ;;  %v1816_v13 = vld [vmem:[#allocation4 + $0x200] ss:$8 sps:$4 sm:$0xff]  }
  0x6f   :  { %v544_v40 = vcombine.low %v418_v30, %v419_v21  ;;  %v545_v41 = vcombine.high %v418_v30, %v419_v21  ;;  %v546_v42 = vcombine.low %v420_v7, %v421_v31  ;;  %v547_v43 = vcombine.high %v420_v7, %v421_v31  ;;  %1204 = vmatpush1.bf16.msra.mxu1 %v1875_v53  ;;  %v1824_v54 = vld [vmem:[#allocation4 + $0x214] ss:$8 sps:$4 sm:$0xff]   ;;  %v1830_v22 = vld [vmem:[#allocation4 + $0x224] ss:$8 sps:$4 sm:$0xff]   ;;  %v1828_v23 = vld [vmem:[#allocation4 + $0x220] ss:$8 sps:$4 sm:$0xff]  }
  0x70   :  { %v548_v48 = vcombine.low %v422_v32, %v423_v36  ;;  %v549_v44 = vcombine.high %v422_v32, %v423_v36  ;;  %v550_v45 = vcombine.low %v424_v38, %v425_v39  ;;  %v551_v49 = vcombine.high %v424_v38, %v425_v39  ;;  %1205 = vmatprep.subr.bf16.mxu1 %v1879_v0  ;;  %v1893_v25 = vld [vmem:[#allocation4 + $0xf0] ss:$8 sps:$4 sm:$0xff]   ;;  %v1902_v27 = vld [vmem:[#allocation4 + $0x304] ss:$8 sps:$4 sm:$0xff]   ;;  %v1900_v30 = vld [vmem:[#allocation4 + $0x300] ss:$8 sps:$4 sm:$0xff]  }
  0x71   :  { %v558_v51 = vrot.slane %v544_v40, %v2158_v11  ;;  %v572_v55 = vrot.slane %v546_v42, %v2158_v11  ;;  %v2361_v56 = vrot.slane %v545_v41, %v2158_v11  ;;  %v2364_v57 = vrot.slane %v547_v43, %v2158_v11  ;;  %v1906_v31 = vld [vmem:[#allocation6 + $0x40] sm:$0xff]   ;;  %v1842_v36 = vld [vmem:[#allocation4 + $0x244] ss:$8 sps:$4 sm:$0xff]   ;;  %v1840_v33 = vld [vmem:[#allocation4 + $0x240] ss:$8 sps:$4 sm:$0xff]  }
  0x72   :  { %v586_v50 = vrot.slane %v548_v48, %v2158_v11  ;;  %v600_v52 = vrot.slane %v550_v45, %v2158_v11  ;;  %v593_v59 = vrot.slane %v549_v44, %v2158_v11  ;;  %v607_v61 = vrot.slane %v551_v49, %v2158_v11  ;;  %v1834_v32 = vld [vmem:[#allocation4 + $0x230] ss:$8 sps:$4 sm:$0xff]   ;;  %v1848_v40 = vld [vmem:[#allocation4 + $0x254] ss:$8 sps:$4 sm:$0xff]   ;;  %v1854_v48 = vld [vmem:[#allocation4 + $0x264] ss:$8 sps:$4 sm:$0xff]  }
  0x73   :  { %v609_v62 = vcombine.high %v558_v51, %v572_v55  ;;  %v608_v63 = vcombine.low %v558_v51, %v572_v55  ;;  %v611_v34 = vcombine.high %v2361_v56, %v2364_v57  ;;  %1206 = vmatpush1.bf16.msra.mxu1 %v1881_v9  ;;  %v610_v21 = vcombine.low %v2361_v56, %v2364_v57  ;;  %v1907_v42 = vld [vmem:[#allocation6] sm:$0xff]   ;;  %v1908_v43 = vld [vmem:[#allocation6 + $0x48] sm:$0xff]   ;;  %v1910_v44 = vld [vmem:[#allocation6 + $0x50] sm:$0xff]  }
  0x74   :  { %v613_v58 = vcombine.high %v586_v50, %v600_v52  ;;  %v612_v60 = vcombine.low %v586_v50, %v600_v52  ;;  %v615_v1 = vcombine.high %v593_v59, %v607_v61  ;;  %1207 = vmatprep.subr.bf16.mxu1 %v1885_v47  ;;  %v614_v7 = vcombine.low %v593_v59, %v607_v61  ;;  %v1846_v46 = vld [vmem:[#allocation4 + $0x250] ss:$8 sps:$4 sm:$0xff]   ;;  %v1860_v45 = vld [vmem:[#allocation4 + $0x274] ss:$8 sps:$4 sm:$0xff]   ;;  %v1866_v51 = vld [vmem:[#allocation4 + $0x284] ss:$8 sps:$4 sm:$0xff]  }
  0x75   :  { %v636_v3 = vrot.slane %v609_v62, %v2158_v11  ;;  %v622_v4 = vrot.slane %v608_v63, %v2158_v11  ;;  %v643_v5 = vrot.slane %v611_v34, %v2158_v11  ;;  %v2381_v38 = vrot.slane %v610_v21, %v2158_v11  ;;  %v1858_v49 = vld [vmem:[#allocation4 + $0x270] ss:$8 sps:$4 sm:$0xff]   ;;  %v1864_v55 = vld [vmem:[#allocation4 + $0x280] ss:$8 sps:$4 sm:$0xff]   ;;  %v1872_v56 = vld [vmem:[#allocation4 + $0x294] ss:$8 sps:$4 sm:$0xff]  }
  0x76   :  { %v664_v6 = vrot.slane %v613_v58, %v2158_v11  ;;  %v650_v8 = vrot.slane %v612_v60, %v2158_v11  ;;  %v671_v10 = vrot.slane %v615_v1, %v2158_v11  ;;  %v2384_v39 = vrot.slane %v614_v7, %v2158_v11  ;;  %v1909_v11 = vld [vmem:[#allocation6 + $0x8] sm:$0xff]   ;;  %v1878_v50 = vld [vmem:[#allocation4 + $0x2a4] ss:$8 sps:$4 sm:$0xff]   ;;  %v1876_v52 = vld [vmem:[#allocation4 + $0x2a0] ss:$8 sps:$4 sm:$0xff]  }
  0x77   :  { %1208 = vmatpush1.bf16.msra.mxu1 %v1887_v16  ;;  %vm1175_vm6 = vcmask 130048   ;;  %v1870_v57 = vld [vmem:[#allocation4 + $0x290] ss:$8 sps:$4 sm:$0xff]   ;;  %v1884_v53 = vld [vmem:[#allocation4 + $0x2b4] ss:$8 sps:$4 sm:$0xff]  }
  0x78   :  { %v677_v12 = vcombine.high %v636_v3, %v664_v6  ;;  %v673_v14 = vcombine.high %v622_v4, %v650_v8  ;;  %v676_v26 = vcombine.low %v636_v3, %v664_v6  ;;  %v678_v15 = vcombine.low %v643_v5, %v671_v10  ;;  %1209 = vmatprep.subr.bf16.mxu1 %v1891_v18  ;;  %v1882_v59 = vld [vmem:[#allocation4 + $0x2b0] ss:$8 sps:$4 sm:$0xff]   ;;  %v1890_v61 = vld [vmem:[#allocation4 + $0x2c4] ss:$8 sps:$4 sm:$0xff]   ;;  %v1888_v62 = vld [vmem:[#allocation4 + $0x2c0] ss:$8 sps:$4 sm:$0xff]  }
  0x79   :  { %v672_v29 = vcombine.low %v622_v4, %v650_v8  ;;  %v675_v41 = vcombine.high %v2381_v38, %v2384_v39  ;;  %v1896_v63 = vld [vmem:[#allocation4 + $0x2d4] ss:$8 sps:$4 sm:$0xff]   ;;  %v1894_v0 = vld [vmem:[#allocation4 + $0x2d0] ss:$8 sps:$4 sm:$0xff]   ;;  %v1899_v34 = vld [vmem:[#allocation4 + $0x2e4] ss:$8 sps:$4 sm:$0xff]   ;;  %v674_v3 = vcombine.low %v2381_v38, %v2384_v39 }
  0x7a   :  { %1254 = vmatprep.mubr.bf16.mxu0 %v677_v12  ;;  %1211 = vmatprep.mubr.bf16.mxu1 %v676_v26  ;;  %v1897_v58 = vld [vmem:[#allocation4 + $0x2e0] ss:$8 sps:$4 sm:$0xff]   ;;  %v1905_v60 = vld [vmem:[#allocation4 + $0x2f4] ss:$8 sps:$4 sm:$0xff]   ;;  %v1903_v1 = vld [vmem:[#allocation4 + $0x2f0] ss:$8 sps:$4 sm:$0xff]  }
  0x7b   :  { %1255 = vmatmul.mubr.bf16.vlgmr.msra.gmra.mrb[0].mxu0 %v673_v14  ;;  %1210 = vmatpush1.bf16.msra.mxu1 %v1893_v25  ;;  %v1911_v4 = vld [vmem:[#allocation6 + $0x10] sm:$0xff]   ;;  %v1912_v5 = vld [vmem:[#allocation6 + $0x58] sm:$0xff]   ;;  %v1914_v8 = vld [vmem:[#allocation6 + $0x60] sm:$0xff]  }
  0x7c   :  { %1266 = vmatpush1.bf16.msra.mxu0 %v1816_v13  ;;  %1297 = vmatprep.mubr.bf16.mxu0 %v678_v15  ;;  %v1913_v6 = vld [vmem:[#allocation6 + $0x18] sm:$0xff]   ;;  %v1915_v9 = vld [vmem:[#allocation6 + $0x20] sm:$0xff]   ;;  %v1916_v10 = vld [vmem:[#allocation6 + $0x68] sm:$0xff]  }
  0x7d   :  { %1267 = vmatprep.subr.bf16.mxu0 %v1824_v54  ;;  %1308 = vmatprep.subr.bf16.mxu1 %v1902_v27  ;;  %v1917_v47 = vld [vmem:[#allocation6 + $0x28] sm:$0xff]   ;;  %v1918_v12 = vld [vmem:[#allocation6 + $0x70] sm:$0xff]   ;;  %v1920_v14 = vld [vmem:[#allocation6 + $0x78] sm:$0xff]   ;;  %v1358_v27 = vstv %s1357_s21 }
  0x7e   :  { %1212 = vmatmul.mubr.bf16.vlgmr.msra.gmra.mrb[0].mxu1 %v672_v29  ;;  %v1919_v13 = vld [vmem:[#allocation6 + $0x30] sm:$0xff]   ;;  %v1921_v26 = vld [vmem:[#allocation6 + $0x38] sm:$0xff]   ;;  %v1362_v29 = vxor.u32 %v1358_v27, %v2061_v37  ;;  %v1361_v21 = vxor.u32 %v1358_v27, %v2059_v35  ;;  %v532_v35 = vsub.s32 1, %v2041_v2 }
  0x7f   :  { %1309 = vmatpush1.bf16.msra.mxu1 %v1900_v30  ;;  %1340 = vmatprep.mubr.bf16.mxu1 %v1978_v24  ;;  %v1852_v24 = vld [vmem:[#allocation4 + $0x260] ss:$8 sps:$4 sm:$0xff]   ;;  %v1359_v30 = vxor.u32 %v1358_v27, %v2049_v17 }
  0x80   :  { %1268 = vmatpush1.bf16.msra.mxu0 %v1822_v19  ;;  %1712 = vmatprep.subr.bf16.mxu1 %v1906_v31  ;;  %v1366_v31 = vshrl.u32 %v1362_v29, 15  ;;  %v524_v17 = vld [vmem:[%s2413_s3] sm:$0x3] }
  0x81   :  { %1269 = vmatprep.subr.bf16.mxu0 %v1830_v22 }
  0x82   :  { %v1370_v39 = vxor.u32 %v1366_v31, %v1362_v29 }
  0x84   :  { %1270 = vmatpush1.bf16.msra.mxu0 %v1828_v23 }
  0x85   :  { %1271 = vmatprep.subr.bf16.mxu0 %v1836_v28  ;;  %v1360_v28 = vxor.u32 %v1358_v27, %v2051_v20 }
  0x86   :  { %1685 = vmatmul.mubr.msk.bf16.vlgmr.msra.gmra.mrb[4].mxu1 %vm1175_vm6, %v675_v41 }
  0x87   :  { %1713 = vmatpush3.bf16.msra.mxu1 %v1907_v42  ;;  %v1364_v7 = vshrl.u32 %v1360_v28, 15  ;;  %v1374_v42 = vmul.u32 739982445, %v1370_v39 }
  0x88   :  { %1272 = vmatpush1.bf16.msra.mxu0 %v1834_v32  ;;  %1714 = vmatprep.subr.bf16.mxu1 %v1908_v43  ;;  %v1363_v32 = vshrl.u32 %v1359_v30, 15  ;;  %v528_v43 = vsub.s32 0, %v2041_v2 }
  0x89   :  { %1273 = vmatprep.subr.bf16.mxu0 %v1842_v36  ;;  %v1365_v36 = vshrl.u32 %v1361_v21, 15  ;;  %v1368_v38 = vxor.u32 %v1364_v7, %v1360_v28 }
  0x8b   :  { %1715 = vmatpush3.bf16.msra.mxu1 %v1909_v11  ;;  %v1372_v41 = vmul.u32 739982445, %v1368_v38  ;;  %v529_v11 = vrot.slane %v524_v17, %v528_v43 }
  0x8c   :  { %1274 = vmatpush1.bf16.msra.mxu0 %v1840_v33  ;;  %1716 = vmatprep.subr.bf16.mxu1 %v1910_v44  ;;  %v1367_v33 = vxor.u32 %v1363_v32, %v1359_v30 }
  0x8d   :  { %1275 = vmatprep.subr.bf16.mxu0 %v1848_v40  ;;  %v1369_v40 = vxor.u32 %v1365_v36, %v1361_v21  ;;  %v1376_v37 = vshrl.u32 %v1372_v41, 12 }
  0x8f   :  { %1717 = vmatpush3.bf16.msra.mxu1 %v1911_v4  ;;  %v1373_v20 = vmul.u32 739982445, %v1369_v40 }
  0x90   :  { %1276 = vmatpush1.bf16.msra.mxu0 %v1846_v46  ;;  %1718 = vmatprep.subr.bf16.mxu1 %v1912_v5  ;;  %v1371_v46 = vmul.u32 739982445, %v1367_v33 }
  0x91   :  { %1277 = vmatprep.subr.bf16.mxu0 %v1854_v48  ;;  %v1378_v48 = vshrl.u32 %v1374_v42, 12 }
  0x92   :  { %v1375_v44 = vshrl.u32 %v1371_v46, 12 }
  0x93   :  { %1719 = vmatpush3.bf16.msra.mxu1 %v1913_v6 }
  0x94   :  { %1278 = vmatpush1.bf16.msra.mxu0 %v1852_v24  ;;  %1720 = vmatprep.subr.bf16.mxu1 %v1914_v8  ;;  %v1377_v24 = vshrl.u32 %v1373_v20, 12 }
  0x95   :  { %1279 = vmatprep.subr.bf16.mxu0 %v1860_v45  ;;  %v533_v45 = vrot.slane %v524_v17, %v532_v35 }
  0x97   :  { %1721 = vmatpush3.bf16.msra.mxu1 %v1915_v9 }
  0x98   :  { %1280 = vmatpush1.bf16.msra.mxu0 %v1858_v49  ;;  %1722 = vmatprep.subr.bf16.mxu1 %v1916_v10  ;;  %v1380_v49 = vxor.u32 %v1376_v37, %v1372_v41 }
  0x99   :  { %1281 = vmatprep.subr.bf16.mxu0 %v1866_v51  ;;  %v1382_v51 = vxor.u32 %v1378_v48, %v1374_v42 }
  0x9a   :  { %v1384_v2 = vshrl.u32 %v1380_v49, 1 }
  0x9b   :  { %1723 = vmatpush3.bf16.msra.mxu1 %v1917_v47 }
  0x9c   :  { %1282 = vmatpush1.bf16.msra.mxu0 %v1864_v55  ;;  %1724 = vmatprep.subr.bf16.mxu1 %v1918_v12  ;;  %vm1388_vm7 = vcmp.ge.s32.totalorder %v1384_v2, 429496730 }
  0x9d   :  { %1283 = vmatprep.subr.bf16.mxu0 %v1872_v56  ;;  %v1379_v56 = vxor.u32 %v1375_v44, %v1371_v46 }
  0x9f   :  { %1725 = vmatpush3.bf16.msra.mxu1 %v1919_v13 }
  0xa0   :  { %1284 = vmatpush1.bf16.msra.mxu0 %v1870_v57  ;;  %1726 = vmatprep.subr.bf16.mxu1 %v1920_v14  ;;  %v1381_v57 = vxor.u32 %v1377_v24, %v1373_v20 }
  0xa1   :  { %1285 = vmatprep.subr.bf16.mxu0 %v1878_v50 }
  0xa2   :  { %v1385_v4 = vshrl.u32 %v1381_v57, 1 }
  0xa3   :  { %1727 = vmatpush3.bf16.msra.mxu1 %v1921_v26 }
  0xa4   :  { %1286 = vmatpush1.bf16.msra.mxu0 %v1876_v52  ;;  %vm1389_vm10 = vcmp.ge.s32.totalorder %v1385_v4, 429496730 }
  0xa5   :  { %1287 = vmatprep.subr.bf16.mxu0 %v1884_v53 }
  0xa8   :  { %1288 = vmatpush1.bf16.msra.mxu0 %v1882_v59 }
  0xa9   :  { %1289 = vmatprep.subr.bf16.mxu0 %v1890_v61 }
  0xac   :  { %1290 = vmatpush1.bf16.msra.mxu0 %v1888_v62 }
  0xad   :  { %1291 = vmatprep.subr.bf16.mxu0 %v1896_v63 }
  0xb0   :  { %1292 = vmatpush1.bf16.msra.mxu0 %v1894_v0 }
  0xb1   :  { %1293 = vmatprep.subr.bf16.mxu0 %v1899_v34  ;;  %v1386_v34 = vshrl.u32 %v1382_v51, 1 }
  0xb3   :  { %vm1390_vm8 = vcmp.ge.s32.totalorder %v1386_v34, 429496730 }
  0xb4   :  { %1294 = vmatpush1.bf16.msra.mxu0 %v1897_v58  ;;  %vm1392_vm11 = vmpackc.low %vm1390_vm8, %vm1388_vm7 }
  0xb5   :  { %1295 = vmatprep.subr.bf16.mxu0 %v1905_v60 }
  0xb8   :  { %1296 = vmatpush1.bf16.msra.mxu0 %v1903_v1 }
  0xbb   :  { %1298 = vmatmul.mubr.bf16.vlgmr.msra.gmra.mrb[0].mxu0 %v674_v3  ;;  %v1383_v3 = vshrl.u32 %v1379_v56, 1 }
  0xbd   :  { %vm1387_vm9 = vcmp.ge.s32.totalorder %v1383_v3, 429496730 }
  0xbe   :  { %vm1391_vm12 = vmpackc.low %vm1389_vm10, %vm1387_vm9 }
 0x151   :  { %v1213_v54 = vpop.f32.mrb[0].mxu1 }
 0x152   :  { %v1215_v15 = vpop.f32.mrb[1].mxu1  ;;  %v1214_v55 = vadd.f32 %v1213_v54, %v529_v11 }
 0x153   :  { %v1217_v16 = vpop.f32.mrb[2].mxu1  ;;  %v1216_v50 = vadd.f32 %v1215_v15, %v533_v45 }
 0x154   :  { %v1219_v18 = vpop.f32.mrb[3].mxu1  ;;  %v1218_v53 = vadd.f32 %v1217_v16, %v529_v11 }
 0x155   :  { %v1220_v62 = vadd.f32 %v1219_v18, %v533_v45 }
 0x159   :  { %v1342_v19 = vpop.f32.mrb[4].mxu1 }
 0x15a   :  { %v1344_v22 = vpop.f32.mrb[5].mxu1 }
 0x15b   :  { %v1346_v23 = vpop.f32.mrb[6].mxu1 }
 0x15c   :  { %v1348_v25 = vpop.f32.mrb[7].mxu1 }
 0x18e   :  { %v1299_v52 = vpop.f32.mrb[0].mxu0 }
 0x18f   :  { %v1735_v59 = vadd.f32 %v1299_v52, %v1214_v55  ;;  %v1301_v61 = vpop.f32.mrb[1].mxu0 }
 0x190   :  { %v1738_v63 = vadd.f32 %v1301_v61, %v1216_v50  ;;  %v1303_v0 = vpop.f32.mrb[2].mxu0 }
 0x191   :  { %v1736_v58 = vadd.f32 %v1735_v59, %v1342_v19  ;;  %v1741_v60 = vadd.f32 %v1303_v0, %v1218_v53  ;;  %v1305_v1 = vpop.f32.mrb[3].mxu0 }
 0x192   :  { %v1739_v5 = vadd.f32 %v1738_v63, %v1344_v22  ;;  %v1744_v6 = vadd.f32 %v1305_v1, %v1220_v62 }
 0x193   :  { %v1742_v8 = vadd.f32 %v1741_v60, %v1346_v23  ;;  %v1351_v10 = vmax.f32 %v1736_v58, 0.0  ;;  %v1686_v23 = vld [vmem:[%s2415_s5] ss:$0 sm:$0xff] }
 0x194   :  { %v1745_v9 = vadd.f32 %v1744_v6, %v1348_v25  ;;  %v1352_v12 = vmax.f32 %v1739_v5, 0.0 }
 0x195   :  { %v1353_v47 = vmax.f32 %v1742_v8, 0.0 }
 0x196   :  { %v1354_v13 = vmax.f32 %v1745_v9, 0.0 }
 0x197   :  { %v1355_v14 = vpack.c.bf16 %v1353_v47, %v1351_v10 }
 0x198   :  { %v1356_v26 = vpack.c.bf16 %v1354_v13, %v1352_v12 }
 0x199   :  { %v1393_v15 = vsel %vm1391_vm12, %v1355_v14, 0 }
 0x19a   :  { %v1394_v54 = vsel %vm1392_vm11, %v1356_v26, 0 }
 0x19b   :  { %1562 = vmatprep.mubr.bf16.mxu1 %v1394_v54 }
 0x19c   :  { %1563 = vmatmul.mubr.bf16.vlgmr.msra.gmra.mrb[8].mxu1 %v1393_v15 }
 0x26f   :  { %v1728_v16 = vpop.f32.mrb[8].mxu1 }
 0x270   :  { %v1729_v18 = vpop.f32.mrb[9].mxu1 }
 0x271   :  { %v1730_v19 = vadd.f32 %v1729_v18, %v1728_v16  ;;  %v1731_v22 = vpop.f32.mrb[10].mxu1 }
 0x272   :  { %v1732_v25 = vpop.f32.mrb[11].mxu1 }
 0x273   :  { %v1733_v27 = vadd.f32 %v1732_v25, %v1731_v22  ;;  %v1565_v28 = vadd.f32 %v1730_v19, %v1686_v23 }
 0x275   :  { %v1568_v29 = vadd.f32 %v1733_v27, %v1686_v23 }
 0x277   :  { %v1710_v30 = vpack.c.bf16 %v1568_v29, %v1565_v28 }
 0x279   :  { %1711 = vst [vmem:[%s2416_s6] sm:$0xff] %v1710_v30  }
 0x27a   :  { %1585 = vsyncpa [#allocation5], 1 }
 0x27b   :  { %1586 = vsyncpa [#allocation7], 1 }

</bundles_post_ra>
